<compile_context>
chip_gen: v5e
topology: v5e:2x2
jax: 0.10.0
libtpu: 0.0.40
codegen_flags: <defaults>
</compile_context>

<pallas_src>
import jax
import jax.numpy as jnp
from jax.experimental import pallas as pl
from jax.experimental.pallas import tpu as pltpu

_LIKELIHOOD_BOUND = 1e-9
_MAX_ENTROPY = 29.897352853986263     # -log2(1e-9)
_LOG2E = 1.4426950408889634           # 1 / ln(2)


def _make_entropy_kernel(num_mean_c: int, reduce_channels: bool):
    """Per-tile kernel. x block is (1, in_c, T): channels on sublanes, a
    lane-dense spatial tile T on lanes; per-channel params are (C, 1)."""

    def kernel(x_ref, inv_s_ref, a_ref, log2num_ref, out_ref):
        blk = x_ref[0]                                   # (in_c, T)
        x = blk[:num_mean_c, :].astype(jnp.float32)      # mean channels only
        inv_s = inv_s_ref[...]                           # (C, 1)  = 1/s
        a = a_ref[...]                                   # (C, 1)  = exp(-0.5/s)
        log2num = log2num_ref[...]                       # (C, 1)  = log2(1 - a^2)

        # likelihood(x) = sigmoid((x+0.5)/s) - sigmoid((x-0.5)/s)
        #               = E * (1 - a^2) / ((1 + E*a) * (a + E)),  E = exp(-|x|/s)
        # Even in x; E <= 1 so no overflow; product form has no cancellation.
        # Taking the entropy in the log domain needs only 2 EUP ops/element.
        u = jnp.abs(x) * inv_s
        e = jnp.exp(-u)                                  # EUP #1
        denom = (1.0 + e * a) * (a + e)
        ent = u * _LOG2E + (jnp.log2(denom) - log2num)   # EUP #2; = -log2(likelihood)
        ent = jnp.minimum(ent, _MAX_ENTROPY)             # == max(likelihood, 1e-9)

        if reduce_channels:
            out_ref[0] = jnp.mean(ent, axis=0, keepdims=True)   # (1, T), XLU reduce
        else:
            out_ref[0] = ent                                    # (C, T)

    return kernel


def _choose_lane_tile(HW: int, in_c: int, out_c: int, itemsize: int) -> int:
    """Largest multiple-of-128 divisor of HW within a double-buffered VMEM
    budget (conservative for v7x's 64 MiB physical VMEM)."""
    if HW % 128 != 0:
        return HW  # lane block must equal the full extent if not 128-divisible
    budget = 12 * 1024 * 1024
    bytes_per_lane = 2 * (in_c * itemsize + out_c * 4)   # double-buffered in+out
    cap = max(128, (budget // bytes_per_lane) // 128 * 128)
    target = min(HW, 2048, cap)
    tile = 128
    for k in range(target // 128, 0, -1):
        if HW % (128 * k) == 0:
            tile = 128 * k
            break
    return tile


def get_entropy_net(x, scales, num_masks: int = 1):
    """Pallas implementation of GetEntropyNet.forward.

    x:      [N, Ctot, H, W] with Ctot = 2*C + num_masks + 1 (NCHW, like torch)
    scales: [C] per-channel scale of the synthetic entropy model
    returns [N, 1, H, W] if num_masks == 1 else [N, C, H, W]
    """
    N, Ctot, H, W = x.shape
    cond_c = Ctot - (num_masks + 1)
    C = cond_c // 2
    assert 2 * C == cond_c, "condition channels must split evenly into mean/scale"
    HW = H * W

    # Free reshape (merges contiguous trailing dims) — no mean slab, no copy.
    x_flat = x.reshape(N, Ctot, HW)

    # If the mean-channel count tiles cleanly on sublanes, DMA only those C
    # channels via the BlockSpec; otherwise DMA the full channel extent and
    # slice inside the kernel (second-to-last block dim must be %8 or full).
    in_c = C if (C % 8 == 0) else Ctot

    reduce_channels = (num_masks == 1)
    out_c = 1 if reduce_channels else C

    T = _choose_lane_tile(HW, in_c, out_c, x.dtype.itemsize)
    n_t = HW // T

    # Per-channel constants, precomputed once on the host (tiny, C-length).
    inv_s = (1.0 / scales.astype(jnp.float32)).reshape(C, 1)
    a = jnp.exp(-0.5 * inv_s)                       # exp(-0.5/s) in (0, 1)
    log2num = jnp.log2(-jnp.expm1(-inv_s))          # log2(1 - a^2), no cancellation

    out_flat = pl.pallas_call(
        _make_entropy_kernel(C, reduce_channels),
        out_shape=jax.ShapeDtypeStruct((N, out_c, HW), jnp.float32),
        grid=(N, n_t),
        in_specs=[
            pl.BlockSpec((1, in_c, T), lambda n, t: (n, 0, t)),  # input tile
            pl.BlockSpec((C, 1), lambda n, t: (0, 0)),           # 1/s
            pl.BlockSpec((C, 1), lambda n, t: (0, 0)),           # exp(-0.5/s)
            pl.BlockSpec((C, 1), lambda n, t: (0, 0)),           # log2(1-a^2)
        ],
        out_specs=pl.BlockSpec((1, out_c, T), lambda n, t: (n, 0, t)),
        compiler_params=pltpu.CompilerParams(
            dimension_semantics=("parallel", "parallel"),
            vmem_limit_bytes=32 * 1024 * 1024,
        ),
    )(x_flat, inv_s, a, log2num)

    return out_flat.reshape(N, out_c, H, W)


def _reference(x, scales, num_masks: int = 1):
    """Pure-JAX reference mirroring the PyTorch forward (sigmoid-difference
    form of the same surrogate likelihood)."""
    N, Ctot, H, W = x.shape
    C = (Ctot - (num_masks + 1)) // 2
    mean = x[:, :C, :, :].astype(jnp.float32)
    s = scales.reshape(1, C, 1, 1).astype(jnp.float32)
    upper = jax.nn.sigmoid((mean + 0.5) / s)
    lower = jax.nn.sigmoid((mean - 0.5) / s)
    like = jnp.maximum(upper - lower, _LIKELIHOOD_BOUND)
    ent = -jnp.log2(like)
    if num_masks == 1:
        ent = jnp.mean(ent, axis=1, keepdims=True)
    return ent


if __name__ == "__main__":
    key = jax.random.PRNGKey(0)

    def run_case(case_key, N, C, H, W, num_masks):
        Ctot = 2 * C + num_masks + 1          # mean + scale + masks + 1
        kx, _ = jax.random.split(case_key)
        x = jax.random.normal(kx, (N, Ctot, H, W), dtype=jnp.float32)
        scales = 0.5 + 0.25 * jnp.arange(C, dtype=jnp.float32)

        out = jax.block_until_ready(get_entropy_net(x, scales, num_masks=num_masks))
        ref = _reference(x, scales, num_masks=num_masks)

        out_c = 1 if num_masks == 1 else C
        assert out.shape == (N, out_c, H, W), out.shape
        # Kernel uses a cancellation-free, algebraically equivalent form of the
        # likelihood; the sigmoid-difference reference loses a few bits in the
        # tails, hence the 1e-4 tolerance.
        assert jnp.allclose(out, ref, rtol=1e-4, atol=1e-4), "mismatch vs reference"

    keys = jax.random.split(key, 3)
    run_case(keys[0], N=2, C=4, H=16, W=16, num_masks=1)   # full-channel DMA + in-kernel slice
    run_case(keys[1], N=2, C=8, H=16, W=16, num_masks=1)   # C % 8 == 0 -> mean-only channel DMA
    run_case(keys[2], N=1, C=4, H=16, W=16, num_masks=2)   # no channel reduction path
    print("KERNEL_OK")
</pallas_src>

<mosaic_0001>
module attributes {stable_mosaic.version = 11 : i64} {
  func.func @kernel(%arg0: i32, %arg1: i32, %arg2: memref<1x10x256xf32, #tpu.memory_space<vmem>>, %arg3: memref<4x1xf32, #tpu.memory_space<vmem>>, %arg4: memref<4x1xf32, #tpu.memory_space<vmem>>, %arg5: memref<4x1xf32, #tpu.memory_space<vmem>>, %arg6: memref<1x1x256xf32, #tpu.memory_space<vmem>>) attributes {dimension_semantics = [#tpu.dimension_semantics<parallel>, #tpu.dimension_semantics<parallel>], iteration_bounds = array<i64: 2, 1>, scalar_prefetch = 0 : i64, scratch_operands = 0 : i64, tpu.core_type = #tpu.core_type<tc>, window_params = [{transform_indices = @transform_0, window_bounds = array<i64: 1, 10, 256>}, {pipeline_mode = #tpu.pipeline_mode<synchronous>, transform_indices = @transform_1, window_bounds = array<i64: 4, 1>}, {pipeline_mode = #tpu.pipeline_mode<synchronous>, transform_indices = @transform_2, window_bounds = array<i64: 4, 1>}, {pipeline_mode = #tpu.pipeline_mode<synchronous>, transform_indices = @transform_3, window_bounds = array<i64: 4, 1>}, {transform_indices = @transform_4, window_bounds = array<i64: 1, 1, 256>}]} {
    %c0 = arith.constant 0 : index
    %c0_0 = arith.constant 0 : index
    %c0_1 = arith.constant 0 : index
    %0 = vector.load %arg2[%c0, %c0_0, %c0_1] : memref<1x10x256xf32, #tpu.memory_space<vmem>>, vector<1x10x256xf32>
    %1 = vector.shape_cast %0 : vector<1x10x256xf32> to vector<10x256xf32>
    %2 = vector.extract_strided_slice %1 {offsets = [0, 0], sizes = [4, 256], strides = [1, 1]} : vector<10x256xf32> to vector<4x256xf32>
    %c0_2 = arith.constant 0 : index
    %c0_3 = arith.constant 0 : index
    %3 = vector.load %arg3[%c0_2, %c0_3] : memref<4x1xf32, #tpu.memory_space<vmem>>, vector<4x1xf32>
    %c0_4 = arith.constant 0 : index
    %c0_5 = arith.constant 0 : index
    %4 = vector.load %arg4[%c0_4, %c0_5] : memref<4x1xf32, #tpu.memory_space<vmem>>, vector<4x1xf32>
    %c0_6 = arith.constant 0 : index
    %c0_7 = arith.constant 0 : index
    %5 = vector.load %arg5[%c0_6, %c0_7] : memref<4x1xf32, #tpu.memory_space<vmem>>, vector<4x1xf32>
    %6 = math.absf %2 : vector<4x256xf32>
    %7 = vector.broadcast %3 : vector<4x1xf32> to vector<4x256xf32>
    %8 = arith.mulf %6, %7 : vector<4x256xf32>
    %cst = arith.constant 0.000000e+00 : f32
    %9 = vector.broadcast %cst : f32 to vector<4x256xf32>
    %10 = arith.subf %9, %8 : vector<4x256xf32>
    %11 = math.exp %10 : vector<4x256xf32>
    %12 = vector.broadcast %4 : vector<4x1xf32> to vector<4x256xf32>
    %13 = arith.mulf %11, %12 : vector<4x256xf32>
    %cst_8 = arith.constant 1.000000e+00 : f32
    %14 = vector.broadcast %cst_8 : f32 to vector<4x256xf32>
    %15 = arith.addf %14, %13 : vector<4x256xf32>
    %16 = vector.broadcast %4 : vector<4x1xf32> to vector<4x256xf32>
    %17 = arith.addf %16, %11 : vector<4x256xf32>
    %18 = arith.mulf %15, %17 : vector<4x256xf32>
    %cst_9 = arith.constant 1.44269502 : f32
    %19 = vector.broadcast %cst_9 : f32 to vector<4x256xf32>
    %20 = arith.mulf %8, %19 : vector<4x256xf32>
    %21 = math.log %18 : vector<4x256xf32>
    %cst_10 = arith.constant 2.000000e+00 : f32
    %22 = math.log %cst_10 : f32
    %23 = vector.broadcast %22 : f32 to vector<4x256xf32>
    %24 = arith.divf %21, %23 : vector<4x256xf32>
    %25 = vector.broadcast %5 : vector<4x1xf32> to vector<4x256xf32>
    %26 = arith.subf %24, %25 : vector<4x256xf32>
    %27 = arith.addf %20, %26 : vector<4x256xf32>
    %cst_11 = arith.constant 29.8973522 : f32
    %28 = vector.broadcast %cst_11 : f32 to vector<4x256xf32>
    %29 = arith.minimumf %27, %28 : vector<4x256xf32>
    %cst_12 = arith.constant dense<0.000000e+00> : vector<256xf32>
    %30 = vector.multi_reduction <add>, %29, %cst_12 [0] : vector<4x256xf32> to vector<256xf32>
    %31 = vector.shape_cast %30 : vector<256xf32> to vector<1x256xf32>
    %cst_13 = arith.constant 4.000000e+00 : f32
    %32 = vector.broadcast %cst_13 : f32 to vector<1x256xf32>
    %33 = arith.divf %31, %32 : vector<1x256xf32>
    %c0_14 = arith.constant 0 : index
    %c0_15 = arith.constant 0 : index
    %c0_16 = arith.constant 0 : index
    %34 = vector.load %arg6[%c0_14, %c0_15, %c0_16] : memref<1x1x256xf32, #tpu.memory_space<vmem>>, vector<1x1x256xf32>
    %35 = vector.shape_cast %34 : vector<1x1x256xf32> to vector<1x256xf32>
    %36 = vector.shape_cast %33 : vector<1x256xf32> to vector<1x1x256xf32>
    tpu.vector_store %arg6[%c0_14, %c0_15, %c0_16], %36 {strides = array<i32>} : memref<1x1x256xf32, #tpu.memory_space<vmem>>, vector<1x1x256xf32>,
    return
  }
  func.func @transform_0(%arg0: i32, %arg1: i32) -> (i32, i32, i32) {
    %c0_i32 = arith.constant 0 : i32
    %c0_i32_0 = arith.constant 0 : i32
    return %arg0, %c0_i32, %arg1 : i32, i32, i32
  }
  func.func @transform_1(%arg0: i32, %arg1: i32) -> (i32, i32) {
    %c0_i32 = arith.constant 0 : i32
    %c0_i32_0 = arith.constant 0 : i32
    %c0_i32_1 = arith.constant 0 : i32
    return %c0_i32, %c0_i32_0 : i32, i32
  }
  func.func @transform_2(%arg0: i32, %arg1: i32) -> (i32, i32) {
    %c0_i32 = arith.constant 0 : i32
    %c0_i32_0 = arith.constant 0 : i32
    %c0_i32_1 = arith.constant 0 : i32
    return %c0_i32, %c0_i32_0 : i32, i32
  }
  func.func @transform_3(%arg0: i32, %arg1: i32) -> (i32, i32) {
    %c0_i32 = arith.constant 0 : i32
    %c0_i32_0 = arith.constant 0 : i32
    %c0_i32_1 = arith.constant 0 : i32
    return %c0_i32, %c0_i32_0 : i32, i32
  }
  func.func @transform_4(%arg0: i32, %arg1: i32) -> (i32, i32, i32) {
    %c0_i32 = arith.constant 0 : i32
    %c0_i32_0 = arith.constant 0 : i32
    return %arg0, %c0_i32, %arg1 : i32, i32, i32
  }
}

</mosaic_0001>

<bundles_post_ra>
// kernel: tpu_custom_call.1
= control target key start
LH: loop header
LB: loop body
LE: loop exit
PB: predicated region body
PF: predicated region fallthrough
CT: control target
= control target key end

     0   :  { %9 = vsyncpa [#allocation3], 0  ;;  %s713_s0 = inlined_call_operand.vmem [shape: f32[2,10,256], index: 0, kind: input, shape index: {}]   ;;  %s714_s1 = inlined_call_operand.vmem [shape: f32[4,1], index: 1, kind: input, shape index: {}]   ;;  %s715_s2 = inlined_call_operand.vmem [shape: f32[4,1], index: 2, kind: input, shape index: {}]   ;;  %s716_s3 = inlined_call_operand.vmem [shape: f32[4,1], index: 3, kind: input, shape index: {}]   ;;  %s717_s4 = inlined_call_operand.hbm [shape: f32[2,1,256], index: 4, kind: output, shape index: {}]  }
   0x1   :  { %11 = vsyncpa [#allocation3 + $0x1], 0  ;;  %s607_s15 = smov 0   ;;  %s609_s16 = smov 0  }
   0x2   :  { %s611_s17 = smov 0   ;;  %s613_s18 = smov 0  }
   0x3   :  { %s615_s19 = smov 0   ;;  %s617_s20 = smov 0  }
   0x4 LB: > { %s414_s21 = sadd.s32 4294967295, %s577_s20   ;;  %s415_s22 = sadd.s32 4294967294, %s577_s20   ;;  %s577_s20 = sphi %s617_s20, %s17_s20   ;;  %s573_s19 = sphi %s615_s19, %s724_s19   ;;  %s569_s18 = sphi %s613_s18, %s723_s18   ;;  %s565_s17 = sphi %s611_s17, %s722_s17   ;;  %s561_s16 = sphi %s609_s16, %s721_s16   ;;  %s557_s15 = sphi %s607_s15, %s720_s15  }
   0x5   : > { %s29_s23 = sadd.s32 1, %s573_s19  ;;  %s129_s24 = sadd.s32 1, %s565_s17 }
   0x6   : > { %p31_p0 = scmp.ge.s32.totalorder %s29_s23, 2  ;;  %p139_p1 = scmp.ne.s32.totalorder %s565_s17, %s561_s16 }
   0x7   : > { %p140_p2 = scmp.eq.s32.totalorder %s414_s21, 1  ;;  %p145_p3 = scmp.ne.s32.totalorder %s561_s16, %s557_s15 }
   0x8   : > { %s726_s23 = smov (%p31_p0, %s29_s23), 0  ;;  %p146_p5 = scmp.eq.s32.totalorder %s415_s22, 1 }
   0x9   : > { %p647_p4 = por %p140_p2, %p139_p1  ;;  %s124_s26 = ssub.s32 %s573_s19, %s726_s23 }
   0xa   : > { %p418_p6 = scmp.ge.s32.totalorder %s577_s20, 1  ;;  %p127_p7 = scmp.eq.s32.totalorder %s124_s26, 0 }
   0xb   : > { %p654_p8 = por %p146_p5, %p145_p3  ;;  %p186_p9 = scmp.lt.s32.totalorder %s577_s20, 3 }
   0xc   : > { %s660_s28 = scalar_select %p127_p7, %s565_s17, %s129_s24  }
   0xd   : > { %p187_p10 = pnand %p418_p6, %p186_p9 }
   0xe   : > { %p217_p11 = scmp.lt.s32.totalorder (!%p187_p10), %s569_s18, 1  ;;  %s213_s14 = sand.u32 (!%p187_p10), 1, %s561_s16  }
   0xf   : > { %190 = sbr.rel (%p187_p10) target bundleno = 195 (0xc3), region = 36  ;;  %s419_s21 = sshll.u32 (!%p187_p10), %s213_s14, 1 }
  0x10   : > { %s423_s22 = sshll.u32 (!%p187_p10), %s569_s18, 1  ;;  %s215_s30 = scalar_lea.vmem (!%p187_p10), [#allocation2], %s419_s21 }
  0x11   : > { %s334_s29 = scalar_lea.hbm (!%p187_p10), %s717_s4, %s423_s22  ;;  %s336_s5 = sshll.u32 (!%p187_p10), %s215_s30, 4  ;;  %s337_s5 = int_to_ptr.vmem [resolvable:$true] %s336_s5 }
  0x12   : > { %s338_s6 = sshll.u32 (!%p187_p10), %s334_s29, 4  ;;  %s519_s11 = scalar_lea.hbm (!%p187_p10), %s717_s4, 4  ;;  %s339_s6 = int_to_ptr.hbm [resolvable:$true] %s338_s6 }
  0x13   : > { %s513_s7 = sshra.s32 (!%p187_p10), %s339_s6, 4  ;;  %s514_s7 = int_to_ptr.hbm [resolvable:$true] %s513_s7 }
  0x14   : > { %v229_v0 = vld [vmem:[%s714_s1] sm:$0xf]  ;;  %v579_v1 = vmov 0   ;;  %s218_s9 = scalar_select %p217_p11, %s569_s18, 1  ;;  %v580_v11 = vmov 0.6931472  }
  0x15   : > { %485 = vset.pattern.permute.xlu0 %v579_v1  ;;  %486 = vset.pattern.permute.xlu1 %v579_v1  ;;  %v231_v2 = vld [vmem:[%s716_s3] sm:$0xf]  ;;  %487 = vrcp.f32 %v580_v11  ;;  %v581_v32 = vmov 4.0   ;;  %vm286_vm1 = vcmask 1043456   ;;  %vm313_vm3 = vcmask 1040384   ;;  %s322_s18 = scalar_lea.sflag [#allocation3], %s213_s14  ;;  %p520_p1 = scmp.lt.s32.totalorder %s514_s7, %s717_s4 }
  0x16   : > { %236 = vperm.xlu0 %485, %v229_v0   ;;  %277 = vperm.xlu1 %486, %v231_v2   ;;  %v230_v3 = vld [vmem:[%s715_s2] sm:$0xf]  ;;  %s426_s10 = sshll.u32 %s218_s9, 5  ;;  %s515_s8 = scalar_lea.hbm %s514_s7, 2 }
  0x17   : > { %s224_s13 = scalar_lea.vmem %s713_s0, %s426_s10  ;;  %p516_p12 = scmp.ne.s32.totalorder %s514_s7, %s515_s8 }
  0x18   : > { %v227_v4 = vld [vmem:[%s224_s13] sm:$0xff]  ;;  %v228_v5 = vld [vmem:[%s224_s13 + $0x8] sm:$0xff]  ;;  %p521_p2 = scmp.lt.s32.totalorder %s519_s11, %s515_s8 }
  0x19   : > { %v232_v6 = vand.u32 2147483647, %v227_v4  ;;  %v233_v7 = vand.u32 2147483647, %v228_v5  ;;  %v316_v5 = vlaneseq  ;;  %p517_p13 = pnand %p516_p12, %p647_p4 }
  0x1a   : > { %p522_p3 = por %p521_p2, %p520_p1 }
  0x1b   : > { %v488_v16 = vpop.eup %487  ;;  %vm318_vm4 = vcmp.lt.s32.totalorder %v316_v5, 256  ;;  %p518_p0 = pneg %p517_p13 }
  0x1c   : > { %v267_v17 = vmul.f32 0.6931472, %v488_v16  ;;  %vm271_vm0 = vweird.f32 %v488_v16 }
  0x1d   : > { %p523_p5 = pnand %p522_p3, %p518_p0 }
  0x1e   : > { %249 = vperm.xlu0 %485, %v230_v3   ;;  %v268_v22 = vsub.f32 1.0, %v267_v17 }
  0x20   : > { %v269_v29 = vmul.f32 %v488_v16, %v268_v22 }
  0x22   : > { %v270_v31 = vadd.f32 %v488_v16, %v269_v29 }
  0x24   : > { %v272_v34 = vsel %vm271_vm0, %v488_v16, %v270_v31 }
  0x88   : > { %v237_v8 = vpop.permute.xlu0 %236  ;;  %v278_v37 = vpop.permute.xlu1 %277 }
  0x89   : > { %v239_v9 = vmul.f32 %v237_v8, %v232_v6  ;;  %v240_v10 = vmul.f32 %v237_v8, %v233_v7 }
  0x8b   : > { %v241_v12 = vsub.f32 0.0, %v239_v9  ;;  %v242_v13 = vsub.f32 0.0, %v240_v10  ;;  %v260_v42 = vmul.f32 1.442695, %v239_v9  ;;  %v261_v44 = vmul.f32 1.442695, %v240_v10 }
  0x8d   : > { %v243_v14 = vmul.f32 1.442695, %v241_v12  ;;  %v245_v15 = vmul.f32 1.442695, %v242_v13 }
  0x8f   : > { %489 = vpow2.f32 %v243_v14 }
  0x90   : > { %491 = vpow2.f32 %v245_v15  ;;  %v250_v19 = vpop.permute.xlu0 %249 }
  0x95   : > { %v490_v18 = vpop.eup %489 }
  0x96   : > { %v492_v20 = vpop.eup %491  ;;  %v252_v21 = vmul.f32 %v490_v18, %v250_v19  ;;  %v256_v25 = vadd.f32 %v490_v18, %v250_v19 }
  0x97   : > { %v253_v23 = vmul.f32 %v492_v20, %v250_v19  ;;  %v257_v27 = vadd.f32 %v492_v20, %v250_v19 }
  0x98   : > { %v254_v24 = vadd.f32 1.0, %v252_v21 }
  0x99   : > { %v255_v26 = vadd.f32 1.0, %v253_v23 }
  0x9a   : > { %v258_v28 = vmul.f32 %v256_v25, %v254_v24 }
  0x9b   : > { %v259_v30 = vmul.f32 %v257_v27, %v255_v26 }
  0x9c   : > { %493 = vlog2.f32 %v258_v28 }
  0x9d   : > { %495 = vlog2.f32 %v259_v30 }
  0x9e   : > { %497 = vrcp.f32 %v581_v32 }
  0xa2   : > { %v494_v33 = vpop.eup %493 }
  0xa3   : > { %v496_v35 = vpop.eup %495  ;;  %v263_v36 = vmul.f32 0.6931472, %v494_v33 }
  0xa4   : > { %v265_v38 = vmul.f32 0.6931472, %v496_v35  ;;  %v498_v39 = vpop.eup %497 }
  0xa5   : > { %v273_v40 = vmul.f32 %v272_v34, %v263_v36  ;;  %v302_v46 = vmul.f32 4.0, %v498_v39  ;;  %vm306_vm2 = vweird.f32 %v498_v39 }
  0xa6   : > { %v274_v41 = vmul.f32 %v272_v34, %v265_v38 }
  0xa7   : > { %v280_v43 = vsub.f32 %v273_v40, %v278_v37  ;;  %v303_v51 = vsub.f32 1.0, %v302_v46 }
  0xa8   : > { %v281_v45 = vsub.f32 %v274_v41, %v278_v37 }
  0xa9   : > { %v282_v47 = vadd.f32 %v280_v43, %v260_v42  ;;  %v304_v57 = vmul.f32 %v498_v39, %v303_v51 }
  0xaa   : > { %v283_v48 = vadd.f32 %v281_v45, %v261_v44 }
  0xab   : > { %v284_v49 = vmin.f32 %v282_v47, 29.897352  ;;  %v305_v62 = vadd.f32 %v498_v39, %v304_v57 }
  0xac   : > { %v285_v50 = vmin.f32 %v283_v48, 29.897352 }
  0xad   : > { %v287_v52 = vsel %vm286_vm1, %v284_v49, 0.0  ;;  %v307_v2 = vsel %vm306_vm2, %v498_v39, %v305_v62 }
  0xae   : > { %v288_v53 = vrot.slane %v287_v52, 4  ;;  %v294_v54 = vsel %vm286_vm1, %v285_v50, 0.0 }
  0xaf   : > { %v295_v55 = vrot.slane %v294_v54, 4 }
  0xb0   : > { %v289_v56 = vadd.f32 %v288_v53, %v287_v52 }
  0xb1   : > { %v296_v58 = vadd.f32 %v295_v55, %v294_v54 }
  0xb2   : > { %v290_v59 = vrot.slane %v289_v56, 2 }
  0xb3   : > { %v297_v60 = vrot.slane %v296_v58, 2 }
  0xb4   : > { %v291_v61 = vadd.f32 %v290_v59, %v289_v56 }
  0xb5   : > { %v298_v63 = vadd.f32 %v297_v60, %v296_v58 }
  0xb6   : > { %v292_v0 = vrot.slane %v291_v61, 1 }
  0xb7   : > { %v299_v1 = vrot.slane %v298_v63, 1 }
  0xb8   : > { %v293_v3 = vadd.f32 %v292_v0, %v291_v61 }
  0xb9   : > { %v300_v4 = vadd.f32 %v299_v1, %v298_v63 }
  0xba   : > { %v308_v7 = vmul.f32 %v307_v2, %v293_v3 }
  0xbb   : > { %v309_v6 = vmul.f32 %v307_v2, %v300_v4 }
  0xbd   : > { %v312_v8 = vrot.slane %v309_v6, 7 }
  0xbf   : > { %v314_v9 = vsel %vm313_vm3, %v308_v7, %v312_v8 }
  0xc0   : > { %320 = vst.msk [vmem:[%s215_s30] sm:$0x3] %vm318_vm4, %v314_v9 }
  0xc1   : > { %526 = shalt.err (!%p523_p5)
}
  0xc2   : > { %427 = dma.vmem_to_hbm [thread:$0]  (%p647_p4), %s337_s5, 32, %s339_s6, %s322_s18  }
  0xc3 PF: > { %p433_p6 = scmp.ge.s32.totalorder %s577_s20, 2  ;;  %s350_s14 = sand.u32 1, %s557_s15  }
  0xc4   : > { %s351_s21 = scalar_lea.sflag [#allocation3], %s350_s14 }
  0xc5   : > { %p430_p7 = pnand %p433_p6, %p654_p8 }
  0xc7   : > { %p431_p9 = pneg %p430_p7 }
  0xc9   : > { %552 = dma.done.wait (%p431_p9), %s351_s21, 32  }
  0xca   : > { %554 = vsyncadd (%p431_p9), %s351_s21, 4294967264  ;;  %s17_s20 = sadd.s32 1, %s577_s20   ;;  %s720_s15 = smov %s561_s16 }
  0xcb   : > { %p14_p10 = scmp.ge.s32.totalorder %s17_s20, 4   ;;  %s721_s16 = smov %s565_s17 }
  0xcc   : > { %s722_s17 = smov %s660_s28  ;;  %s723_s18 = smov %s573_s19 }
  0xcd   : > { %s724_s19 = smov %s726_s23  ;;  %16 = sbr.rel (!%p14_p10) target bundleno = 4 (0x4), region = 71 }
  0xd2   :  { %357 = vsyncpa [#allocation3], 1 }
  0xd3   :  { %359 = vsyncpa [#allocation3 + $0x1], 1 }

</bundles_post_ra>
